<compile_context>
chip_gen: v5e
topology: v5e:2x2
jax: 0.10.0
libtpu: 0.0.40
codegen_flags: <defaults>
</compile_context>

<pallas_src>
import functools

import jax
import jax.numpy as jnp
import numpy as np
from jax.experimental import pallas as pl
from jax.experimental.pallas import tpu as pltpu


# ----------------------------------------------------------------------------
# TPS parameter solve (tiny (N+3)x(N+3) system per batch) -- plain JAX glue.
# ----------------------------------------------------------------------------
def tps_solve(ctrl, target, eps):
    """ctrl, target: [B, N, 2] -> params [B, N+3, 2] with row order [U.., 1, x, y]."""
    B, N, _ = ctrl.shape
    d2 = jnp.sum((ctrl[:, :, None, :] - ctrl[:, None, :, :]) ** 2, axis=-1)  # [B,N,N]
    K = d2 * jnp.log(d2 + eps)
    ones = jnp.ones((B, N, 1), ctrl.dtype)
    P = jnp.concatenate([ones, ctrl], axis=2)                                 # [B,N,3]
    L_top = jnp.concatenate([K, P], axis=2)                                   # [B,N,N+3]
    L_bot = jnp.concatenate(
        [jnp.transpose(P, (0, 2, 1)), jnp.zeros((B, 3, 3), ctrl.dtype)], axis=2
    )                                                                         # [B,3,N+3]
    L = jnp.concatenate([L_top, L_bot], axis=1)                               # [B,N+3,N+3]
    Y = jnp.concatenate([target, jnp.zeros((B, 3, 2), ctrl.dtype)], axis=1)   # [B,N+3,2]
    return jnp.linalg.solve(L, Y)                                             # [B,N+3,2]


# ----------------------------------------------------------------------------
# Pallas kernel: in-kernel pixel coords + TPS warp + fused normalization +
# channel-fused separable bilinear grid_sample for one (batch, pixel-tile).
# ----------------------------------------------------------------------------
def _poly_to_image_kernel(ctrl_ref, params_ref, img_ref, out_ref,
                          *, H, W, C, N, origin, eps):
    f32 = jnp.float32
    TM = out_ref.shape[-1]

    # ---- pixel coordinates of this tile of the flattened HxW grid ------------
    t = pl.program_id(1)
    base = t * TM                                   # flat pixel offset of the tile
    h0 = jax.lax.div(base, jnp.int32(W))            # scalar divmod by constant W
    w0 = base - h0 * W
    lane = jax.lax.broadcasted_iota(jnp.int32, (1, TM), 1)
    nf = (w0 + lane).astype(f32)                    # [1,TM], values < W + TM (exact in f32)
    # rows advanced within the tile; the +0.5 offset makes the f32 floor-div exact.
    q = jnp.floor((nf + 0.5) / W)                   # [1,TM]
    px = nf - q * W + origin[1]                     # pixel w-coordinate (+ origin[1])
    py = h0.astype(f32) + q + origin[0]             # pixel h-coordinate (+ origin[0])

    # ---- thin-plate-spline warp (tiny N -> VPU/XLU, keep off the MXU) ---------
    ctrl = ctrl_ref[0].astype(f32)                  # [N,2] control points (w, h)
    cx = ctrl[:, 0:1]                               # [N,1]
    cy = ctrl[:, 1:2]                               # [N,1]
    prm = params_ref[0].astype(f32)                 # [N+3,2] params, rows [U.., 1, w, h]

    d2 = (px - cx) ** 2 + (py - cy) ** 2            # [N,TM]
    U = d2 * jnp.log(d2 + eps)                      # [N,TM]

    warp_x = (jnp.sum(U * prm[:N, 0:1], axis=0, keepdims=True)
              + prm[N:N + 1, 0:1]
              + prm[N + 1:N + 2, 0:1] * px
              + prm[N + 2:N + 3, 0:1] * py)                                  # [1,TM]
    warp_y = (jnp.sum(U * prm[:N, 1:2], axis=0, keepdims=True)
              + prm[N:N + 1, 1:2]
              + prm[N + 1:N + 2, 1:2] * px
              + prm[N + 2:N + 3, 1:2] * py)                                  # [1,TM]

    # ---- fused normalize -> grid_sample(align_corners=False) pixel coords -----
    ix = (warp_x - origin[1]) * (W / (W - 1.0)) - 0.5                        # [1,TM]
    iy = (warp_y - origin[0]) * (H / (H - 1.0)) - 0.5                        # [1,TM]

    x0f = jnp.floor(ix)
    y0f = jnp.floor(iy)
    x0 = x0f.astype(jnp.int32)
    y0 = y0f.astype(jnp.int32)
    wx1 = ix - x0f
    wx0 = 1.0 - wx1
    wy1 = iy - y0f
    wy0 = 1.0 - wy1

    # Separable bilinear weights.  Out-of-range corners (x0 < 0, x0+1 >= W, ...)
    # match no iota row/column, implementing zeros padding for free.
    dx = jax.lax.broadcasted_iota(jnp.int32, (W, TM), 0) - x0                # [W,TM]
    dy = jax.lax.broadcasted_iota(jnp.int32, (H, TM), 0) - y0                # [H,TM]
    Wx = jnp.where(dx == 0, wx0, jnp.where(dx == 1, wx1, 0.0))               # [W,TM] f32
    Wx = Wx.astype(jnp.bfloat16)                                             # bf16 MXU path
    Wy = jnp.where(dy == 0, wy0, jnp.where(dy == 1, wy1, 0.0))               # [H,TM] f32

    # ---- sampling: one bf16 MXU matmul over all channels, VPU reduce over H ---
    img = img_ref[0]                                                         # [C*H,W] bf16
    t_cw = jnp.dot(img, Wx, preferred_element_type=f32)                      # [C*H,TM] f32
    if H % 8 == 0:
        samp = t_cw.reshape(C, H, TM)                                        # free sublane split
        out = jnp.sum(samp * Wy[None, :, :], axis=1)                         # [C,TM]
    else:
        # H not sublane-aligned: per-channel static slices avoid an awkward reshape.
        rows = [jnp.sum(t_cw[c * H:(c + 1) * H, :] * Wy, axis=0, keepdims=True)
                for c in range(C)]
        out = jnp.concatenate(rows, axis=0)                                  # [C,TM]
    out_ref[0] = out.astype(out_ref.dtype)                                   # single store


# ----------------------------------------------------------------------------
# VMEM-aware pixel-tile selection.
# ----------------------------------------------------------------------------
def _choose_tile_m(M, C, H, W, N, budget_bytes, want_two_tiles):
    def vmem_estimate(tm):
        img = 2 * (2 * C * H * W)            # double-buffered bf16 image block
        outb = 2 * (4 * C * tm)              # double-buffered f32 output block
        per_px = (2 * W                      # Wx (bf16)
                  + 4 * H                    # Wy (f32)
                  + 4 * (W + H)              # dx/dy iota intermediates (int32)
                  + 8 * N                    # d2 + U (f32)
                  + 8 * C * H                # matmul result + Wy product (f32)
                  + 64)                      # misc small [*,TM] temporaries
        return img + outb + per_px * tm

    m_ceil = max(128, -(-M // 128) * 128)
    tile = 128
    for cand in (4096, 2048, 1024, 512, 256, 128):
        if cand <= m_ceil and vmem_estimate(cand) <= budget_bytes:
            tile = cand
            break
    if want_two_tiles:                        # v7x: keep both TensorCores busy at B == 1
        while tile > 128 and -(-M // tile) < 2:
            tile //= 2
    return tile


# ----------------------------------------------------------------------------
# Wrapper: reproduces PolyToImage2D.forward.
# ----------------------------------------------------------------------------
def poly_to_image_2d(x, poly, image, origin, swap_xy, eps=1e-7, tile_m=None,
                     vmem_budget_bytes=24 * 1024 * 1024):
    """x: [B,N,2]  poly: [1 or B, N, 2]  image: [1 or B, C, H, W] -> [B, C, H, W]."""
    x = x.astype(jnp.float32)
    poly = poly.astype(jnp.float32)
    if swap_xy:                        # poly flip is done in __init__ in torch
        poly = jnp.flip(poly, axis=2)
        x = jnp.flip(x, axis=2)

    B, N, _ = x.shape
    poly_b = jnp.broadcast_to(poly, (B, N, 2)) if poly.shape[0] == 1 else poly

    Bi, C, H, W = image.shape
    assert Bi in (1, B), (Bi, B)
    M = H * W

    # TPS parameters (tiny batched solve), natural [B, N+3, 2] layout for the kernel.
    params = tps_solve(x, poly_b, eps)                     # [B, N+3, 2] f32

    # Pixel-tile size: VMEM-budgeted, lane-aligned; pad M up to a tile multiple.
    if tile_m is None:
        tile_m = _choose_tile_m(M, C, H, W, N, vmem_budget_bytes,
                                want_two_tiles=(B == 1))
    assert tile_m % 128 == 0 and tile_m > 0, tile_m
    n_t = -(-M // tile_m)
    M_pad = n_t * tile_m

    # Image flattened to [Bi, C*H, W] (free NCHW metadata change) and kept in bf16
    # so the sampling matmul runs on the bf16 MXU path with halved HBM traffic.
    img_flat = image.reshape(Bi, C * H, W).astype(jnp.bfloat16)

    # Batch-1 image stays batch-1 in HBM; index_map just keeps pointing at block 0.
    if Bi == 1:
        img_map = lambda b, t: (0, 0, 0)
    else:
        img_map = lambda b, t: (b, 0, 0)

    kernel = functools.partial(
        _poly_to_image_kernel, H=H, W=W, C=C, N=N,
        origin=(float(origin[0]), float(origin[1])), eps=float(eps))

    out_flat = pl.pallas_call(
        kernel,
        out_shape=jax.ShapeDtypeStruct((B, C, M_pad), jnp.float32),
        grid_spec=pltpu.PrefetchScalarGridSpec(
            num_scalar_prefetch=0,
            grid=(B, n_t),
            in_specs=[
                pl.BlockSpec((1, N, 2), lambda b, t: (b, 0, 0)),        # control points
                pl.BlockSpec((1, N + 3, 2), lambda b, t: (b, 0, 0)),    # TPS params
                pl.BlockSpec((1, C * H, W), img_map),                   # image [Bi,C*H,W] bf16
            ],
            out_specs=pl.BlockSpec((1, C, tile_m), lambda b, t: (b, 0, t)),
        ),
        compiler_params=pltpu.CompilerParams(
            dimension_semantics=("parallel", "parallel"),
            vmem_limit_bytes=48 * 1024 * 1024),
    )(x, params, img_flat)

    out = out_flat[:, :, :M].reshape(B, C, H, W)           # drop pixel padding, NCHW
    return out.astype(image.dtype)


# ----------------------------------------------------------------------------
# Pure-JAX reference (same math, gather-based grid_sample) for verification.
# ----------------------------------------------------------------------------
def poly_to_image_2d_ref(x, poly, image, origin, swap_xy, eps=1e-7):
    poly_ = jnp.flip(poly, axis=2) if swap_xy else poly
    if swap_xy:
        x = jnp.flip(x, axis=2)
    B, N, _ = x.shape
    if poly_.shape[0] == 1:
        poly_ = jnp.broadcast_to(poly_, (B,) + poly_.shape[1:])
    if image.shape[0] == 1:
        image = jnp.broadcast_to(image, (B,) + image.shape[1:])
    C, H, W = image.shape[1:]
    M = H * W

    hs = origin[0] + jnp.arange(H, dtype=x.dtype)
    ws = origin[1] + jnp.arange(W, dtype=x.dtype)
    hh, ww = jnp.meshgrid(hs, ws, indexing="ij")
    grid_pts = jnp.stack([ww.reshape(-1), hh.reshape(-1)], axis=1)  # [M, 2]

    params = tps_solve(x, poly_, eps)
    d2 = jnp.sum((grid_pts[None, :, None, :] - x[:, None, :, :]) ** 2, axis=-1)  # [B,M,N]
    U = d2 * jnp.log(d2 + eps)
    ones = jnp.ones((B, M, 1), x.dtype)
    feat = jnp.concatenate(
        [U, ones, jnp.broadcast_to(grid_pts[None], (B, M, 2))], axis=-1)
    warped = jnp.einsum("bmk,bkc->bmc", feat, params)               # [B, M, 2]
    gw = warped[..., 0]
    gh = warped[..., 1]
    gh = -1.0 + (gh - origin[0]) * 2.0 / (H - 1)
    gw = -1.0 + (gw - origin[1]) * 2.0 / (W - 1)

    ix = ((gw + 1.0) * W - 1.0) * 0.5
    iy = ((gh + 1.0) * H - 1.0) * 0.5
    x0f = jnp.floor(ix)
    y0f = jnp.floor(iy)
    x0 = x0f.astype(jnp.int32)
    y0 = y0f.astype(jnp.int32)
    x1 = x0 + 1
    y1 = y0 + 1
    wx1 = ix - x0f
    wx0 = 1.0 - wx1
    wy1 = iy - y0f
    wy0 = 1.0 - wy1

    imgf = image.reshape(B, C, M)

    def gather(xi, yi, w):
        valid = ((xi >= 0) & (xi < W) & (yi >= 0) & (yi < H)).astype(jnp.float32)
        idx = jnp.clip(yi, 0, H - 1) * W + jnp.clip(xi, 0, W - 1)   # [B, M]
        idx_b = jnp.broadcast_to(idx[:, None, :], (B, C, M))
        vals = jnp.take_along_axis(imgf, idx_b, axis=2)             # [B, C, M]
        return vals * (w * valid)[:, None, :]

    out = (gather(x0, y0, wx0 * wy0) + gather(x1, y0, wx1 * wy0)
           + gather(x0, y1, wx0 * wy1) + gather(x1, y1, wx1 * wy1))
    return out.reshape(B, C, H, W)


# ----------------------------------------------------------------------------
if __name__ == "__main__":
    key = jax.random.PRNGKey(0)
    k_img, k_pert, k_img2, k_x2 = jax.random.split(key, 4)

    # bf16 sampling path: tolerance reflects bf16 image + bf16 bilinear weights
    # (worst-case ~2^-8 relative on N(0,1)-scale pixel values).
    TOL = 3e-2

    # ---------------- config 1: shared (batch-1) image, 16x16, C=4 ------------
    B, N, C, H, W = 2, 8, 4, 16, 16
    origin = (0.0, 0.0)
    eps = 1e-7

    ang = np.linspace(0.0, 2.0 * np.pi, N, endpoint=False)
    poly_np = np.stack([7.5 + 5.0 * np.cos(ang), 7.5 + 5.0 * np.sin(ang)], axis=1)
    poly = jnp.asarray(poly_np, dtype=jnp.float32)[None]            # [1, N, 2]
    pert = 1.5 * jax.random.normal(k_pert, (B, N, 2), dtype=jnp.float32)
    x = jnp.broadcast_to(poly, (B, N, 2)) + pert                    # [B, N, 2]
    image = jax.random.normal(k_img, (1, C, H, W), dtype=jnp.float32)

    ref = jax.block_until_ready(poly_to_image_2d_ref(x, poly, image, origin, False, eps))

    out = jax.block_until_ready(
        poly_to_image_2d(x, poly, image, origin, False, eps, tile_m=128))
    assert out.shape == (B, C, H, W), out.shape
    err = float(jnp.max(jnp.abs(out - ref)))
    assert err < TOL, f"config1 (tile_m=128) mismatch vs reference: {err}"

    out2 = jax.block_until_ready(poly_to_image_2d(x, poly, image, origin, False, eps))
    err2 = float(jnp.max(jnp.abs(out2 - ref)))
    assert err2 < TOL, f"config1 (auto tile) mismatch vs reference: {err2}"

    # ----- config 2: per-batch images, non-128-divisible M (padding), swap_xy --
    B2, N2, C2, H2, W2 = 2, 6, 3, 8, 20
    origin2 = (1.0, -2.0)
    ang2 = np.linspace(0.0, 2.0 * np.pi, N2, endpoint=False)
    h_c = 4.5 + 2.5 * np.sin(ang2)          # within [origin2[0], origin2[0]+H2-1]
    w_c = 7.5 + 6.0 * np.cos(ang2)          # within [origin2[1], origin2[1]+W2-1]
    poly2 = jnp.asarray(np.stack([h_c, w_c], axis=1), jnp.float32)[None]  # (h, w); flipped inside
    x2 = (jnp.broadcast_to(poly2, (B2, N2, 2))
          + 0.5 * jax.random.normal(k_x2, (B2, N2, 2), dtype=jnp.float32))
    image2 = jax.random.normal(k_img2, (B2, C2, H2, W2), dtype=jnp.float32)

    ref2 = jax.block_until_ready(
        poly_to_image_2d_ref(x2, poly2, image2, origin2, True, eps))
    out3 = jax.block_until_ready(
        poly_to_image_2d(x2, poly2, image2, origin2, True, eps))
    assert out3.shape == (B2, C2, H2, W2), out3.shape
    err3 = float(jnp.max(jnp.abs(out3 - ref2)))
    assert err3 < TOL, f"config2 (padded M, per-batch image) mismatch: {err3}"

    print("KERNEL_OK")
</pallas_src>

<mosaic_0001>
module attributes {stable_mosaic.version = 11 : i64} {
  func.func @_poly_to_image_kernel(%arg0: i32, %arg1: i32, %arg2: memref<1x8x2xf32, #tpu.memory_space<vmem>>, %arg3: memref<1x11x2xf32, #tpu.memory_space<vmem>>, %arg4: memref<1x64x16xbf16, #tpu.memory_space<vmem>>, %arg5: memref<1x4x128xf32, #tpu.memory_space<vmem>>) attributes {dimension_semantics = [#tpu.dimension_semantics<parallel>, #tpu.dimension_semantics<parallel>], iteration_bounds = array<i64: 2, 2>, scalar_prefetch = 0 : i64, scratch_operands = 0 : i64, tpu.core_type = #tpu.core_type<tc>, window_params = [{transform_indices = @transform_0, window_bounds = array<i64: 1, 8, 2>}, {transform_indices = @transform_1, window_bounds = array<i64: 1, 11, 2>}, {pipeline_mode = #tpu.pipeline_mode<synchronous>, transform_indices = @transform_2, window_bounds = array<i64: 1, 64, 16>}, {transform_indices = @transform_3, window_bounds = array<i64: 1, 4, 128>}]} {
    %c128_i32 = arith.constant 128 : i32
    %0 = arith.muli %arg1, %c128_i32 : i32
    %c16_i32 = arith.constant 16 : i32
    %1 = arith.divsi %0, %c16_i32 : i32
    %c16_i32_0 = arith.constant 16 : i32
    %2 = arith.muli %1, %c16_i32_0 : i32
    %3 = arith.subi %0, %2 : i32
    %4 = tpu.iota {dimensions = array<i32: 1>} : vector<1x128xi32>
    %5 = vector.broadcast %3 : i32 to vector<1x128xi32>
    %6 = arith.addi %5, %4 : vector<1x128xi32>
    %7 = arith.sitofp %6 : vector<1x128xi32> to vector<1x128xf32>
    %cst = arith.constant 5.000000e-01 : f32
    %8 = vector.broadcast %cst : f32 to vector<1x128xf32>
    %9 = arith.addf %7, %8 : vector<1x128xf32>
    %cst_1 = arith.constant 1.600000e+01 : f32
    %10 = vector.broadcast %cst_1 : f32 to vector<1x128xf32>
    %11 = arith.divf %9, %10 : vector<1x128xf32>
    %12 = math.floor %11 : vector<1x128xf32>
    %cst_2 = arith.constant 1.600000e+01 : f32
    %13 = vector.broadcast %cst_2 : f32 to vector<1x128xf32>
    %14 = arith.mulf %12, %13 : vector<1x128xf32>
    %15 = arith.subf %7, %14 : vector<1x128xf32>
    %cst_3 = arith.constant 0.000000e+00 : f32
    %16 = vector.broadcast %cst_3 : f32 to vector<1x128xf32>
    %17 = arith.addf %15, %16 : vector<1x128xf32>
    %18 = arith.sitofp %1 : i32 to f32
    %19 = vector.broadcast %18 : f32 to vector<1x128xf32>
    %20 = arith.addf %19, %12 : vector<1x128xf32>
    %cst_4 = arith.constant 0.000000e+00 : f32
    %21 = vector.broadcast %cst_4 : f32 to vector<1x128xf32>
    %22 = arith.addf %20, %21 : vector<1x128xf32>
    %c0 = arith.constant 0 : index
    %c0_5 = arith.constant 0 : index
    %c0_6 = arith.constant 0 : index
    %23 = vector.load %arg2[%c0, %c0_5, %c0_6] : memref<1x8x2xf32, #tpu.memory_space<vmem>>, vector<1x8x2xf32>
    %24 = vector.shape_cast %23 : vector<1x8x2xf32> to vector<8x2xf32>
    %25 = vector.extract_strided_slice %24 {offsets = [0, 0], sizes = [8, 1], strides = [1, 1]} : vector<8x2xf32> to vector<8x1xf32>
    %26 = vector.extract_strided_slice %24 {offsets = [0, 1], sizes = [8, 1], strides = [1, 1]} : vector<8x2xf32> to vector<8x1xf32>
    %c0_7 = arith.constant 0 : index
    %c0_8 = arith.constant 0 : index
    %c0_9 = arith.constant 0 : index
    %27 = vector.load %arg3[%c0_7, %c0_8, %c0_9] : memref<1x11x2xf32, #tpu.memory_space<vmem>>, vector<1x11x2xf32>
    %28 = vector.shape_cast %27 : vector<1x11x2xf32> to vector<11x2xf32>
    %29 = vector.broadcast %17 : vector<1x128xf32> to vector<8x128xf32>
    %30 = vector.broadcast %25 : vector<8x1xf32> to vector<8x128xf32>
    %31 = arith.subf %29, %30 : vector<8x128xf32>
    %32 = arith.mulf %31, %31 : vector<8x128xf32>
    %33 = vector.broadcast %22 : vector<1x128xf32> to vector<8x128xf32>
    %34 = vector.broadcast %26 : vector<8x1xf32> to vector<8x128xf32>
    %35 = arith.subf %33, %34 : vector<8x128xf32>
    %36 = arith.mulf %35, %35 : vector<8x128xf32>
    %37 = arith.addf %32, %36 : vector<8x128xf32>
    %cst_10 = arith.constant 1.000000e-07 : f32
    %38 = vector.broadcast %cst_10 : f32 to vector<8x128xf32>
    %39 = arith.addf %37, %38 : vector<8x128xf32>
    %40 = math.log %39 : vector<8x128xf32>
    %41 = arith.mulf %37, %40 : vector<8x128xf32>
    %42 = vector.extract_strided_slice %28 {offsets = [0, 0], sizes = [8, 1], strides = [1, 1]} : vector<11x2xf32> to vector<8x1xf32>
    %43 = vector.broadcast %42 : vector<8x1xf32> to vector<8x128xf32>
    %44 = arith.mulf %41, %43 : vector<8x128xf32>
    %cst_11 = arith.constant dense<0.000000e+00> : vector<128xf32>
    %45 = vector.multi_reduction <add>, %44, %cst_11 [0] : vector<8x128xf32> to vector<128xf32>
    %46 = vector.shape_cast %45 : vector<128xf32> to vector<1x128xf32>
    %47 = vector.extract_strided_slice %28 {offsets = [8, 0], sizes = [1, 1], strides = [1, 1]} : vector<11x2xf32> to vector<1x1xf32>
    %48 = vector.broadcast %47 : vector<1x1xf32> to vector<1x128xf32>
    %49 = arith.addf %46, %48 : vector<1x128xf32>
    %50 = vector.extract_strided_slice %28 {offsets = [9, 0], sizes = [1, 1], strides = [1, 1]} : vector<11x2xf32> to vector<1x1xf32>
    %51 = vector.broadcast %50 : vector<1x1xf32> to vector<1x128xf32>
    %52 = arith.mulf %51, %17 : vector<1x128xf32>
    %53 = arith.addf %49, %52 : vector<1x128xf32>
    %54 = vector.extract_strided_slice %28 {offsets = [10, 0], sizes = [1, 1], strides = [1, 1]} : vector<11x2xf32> to vector<1x1xf32>
    %55 = vector.broadcast %54 : vector<1x1xf32> to vector<1x128xf32>
    %56 = arith.mulf %55, %22 : vector<1x128xf32>
    %57 = arith.addf %53, %56 : vector<1x128xf32>
    %58 = vector.extract_strided_slice %28 {offsets = [0, 1], sizes = [8, 1], strides = [1, 1]} : vector<11x2xf32> to vector<8x1xf32>
    %59 = vector.broadcast %58 : vector<8x1xf32> to vector<8x128xf32>
    %60 = arith.mulf %41, %59 : vector<8x128xf32>
    %cst_12 = arith.constant dense<0.000000e+00> : vector<128xf32>
    %61 = vector.multi_reduction <add>, %60, %cst_12 [0] : vector<8x128xf32> to vector<128xf32>
    %62 = vector.shape_cast %61 : vector<128xf32> to vector<1x128xf32>
    %63 = vector.extract_strided_slice %28 {offsets = [8, 1], sizes = [1, 1], strides = [1, 1]} : vector<11x2xf32> to vector<1x1xf32>
    %64 = vector.broadcast %63 : vector<1x1xf32> to vector<1x128xf32>
    %65 = arith.addf %62, %64 : vector<1x128xf32>
    %66 = vector.extract_strided_slice %28 {offsets = [9, 1], sizes = [1, 1], strides = [1, 1]} : vector<11x2xf32> to vector<1x1xf32>
    %67 = vector.broadcast %66 : vector<1x1xf32> to vector<1x128xf32>
    %68 = arith.mulf %67, %17 : vector<1x128xf32>
    %69 = arith.addf %65, %68 : vector<1x128xf32>
    %70 = vector.extract_strided_slice %28 {offsets = [10, 1], sizes = [1, 1], strides = [1, 1]} : vector<11x2xf32> to vector<1x1xf32>
    %71 = vector.broadcast %70 : vector<1x1xf32> to vector<1x128xf32>
    %72 = arith.mulf %71, %22 : vector<1x128xf32>
    %73 = arith.addf %69, %72 : vector<1x128xf32>
    %cst_13 = arith.constant 0.000000e+00 : f32
    %74 = vector.broadcast %cst_13 : f32 to vector<1x128xf32>
    %75 = arith.subf %57, %74 : vector<1x128xf32>
    %cst_14 = arith.constant 1.06666672 : f32
    %76 = vector.broadcast %cst_14 : f32 to vector<1x128xf32>
    %77 = arith.mulf %75, %76 : vector<1x128xf32>
    %cst_15 = arith.constant 5.000000e-01 : f32
    %78 = vector.broadcast %cst_15 : f32 to vector<1x128xf32>
    %79 = arith.subf %77, %78 : vector<1x128xf32>
    %cst_16 = arith.constant 0.000000e+00 : f32
    %80 = vector.broadcast %cst_16 : f32 to vector<1x128xf32>
    %81 = arith.subf %73, %80 : vector<1x128xf32>
    %cst_17 = arith.constant 1.06666672 : f32
    %82 = vector.broadcast %cst_17 : f32 to vector<1x128xf32>
    %83 = arith.mulf %81, %82 : vector<1x128xf32>
    %cst_18 = arith.constant 5.000000e-01 : f32
    %84 = vector.broadcast %cst_18 : f32 to vector<1x128xf32>
    %85 = arith.subf %83, %84 : vector<1x128xf32>
    %86 = math.floor %79 : vector<1x128xf32>
    %87 = math.floor %85 : vector<1x128xf32>
    %88 = arith.fptosi %86 : vector<1x128xf32> to vector<1x128xi32>
    %89 = arith.fptosi %87 : vector<1x128xf32> to vector<1x128xi32>
    %90 = arith.subf %79, %86 : vector<1x128xf32>
    %cst_19 = arith.constant 1.000000e+00 : f32
    %91 = vector.broadcast %cst_19 : f32 to vector<1x128xf32>
    %92 = arith.subf %91, %90 : vector<1x128xf32>
    %93 = arith.subf %85, %87 : vector<1x128xf32>
    %cst_20 = arith.constant 1.000000e+00 : f32
    %94 = vector.broadcast %cst_20 : f32 to vector<1x128xf32>
    %95 = arith.subf %94, %93 : vector<1x128xf32>
    %96 = tpu.iota {dimensions = array<i32: 0>} : vector<16x128xi32>
    %97 = vector.broadcast %88 : vector<1x128xi32> to vector<16x128xi32>
    %98 = arith.subi %96, %97 : vector<16x128xi32>
    %99 = tpu.iota {dimensions = array<i32: 0>} : vector<16x128xi32>
    %100 = vector.broadcast %89 : vector<1x128xi32> to vector<16x128xi32>
    %101 = arith.subi %99, %100 : vector<16x128xi32>
    %c0_i32 = arith.constant 0 : i32
    %102 = vector.broadcast %c0_i32 : i32 to vector<16x128xi32>
    %103 = arith.cmpi eq, %98, %102 : vector<16x128xi32>
    %c1_i32 = arith.constant 1 : i32
    %104 = vector.broadcast %c1_i32 : i32 to vector<16x128xi32>
    %105 = arith.cmpi eq, %98, %104 : vector<16x128xi32>
    %cst_21 = arith.constant 0.000000e+00 : f32
    %106 = vector.shape_cast %90 : vector<1x128xf32> to vector<1x128xf32>
    %107 = vector.broadcast %106 : vector<1x128xf32> to vector<16x128xf32>
    %108 = vector.broadcast %cst_21 : f32 to vector<16x128xf32>
    %109 = arith.select %105, %107, %108 : vector<16x128xi1>, vector<16x128xf32>
    %110 = vector.shape_cast %92 : vector<1x128xf32> to vector<1x128xf32>
    %111 = vector.broadcast %110 : vector<1x128xf32> to vector<16x128xf32>
    %112 = arith.select %103, %111, %109 : vector<16x128xi1>, vector<16x128xf32>
    %113 = arith.truncf %112 : vector<16x128xf32> to vector<16x128xbf16>
    %c0_i32_22 = arith.constant 0 : i32
    %114 = vector.broadcast %c0_i32_22 : i32 to vector<16x128xi32>
    %115 = arith.cmpi eq, %101, %114 : vector<16x128xi32>
    %c1_i32_23 = arith.constant 1 : i32
    %116 = vector.broadcast %c1_i32_23 : i32 to vector<16x128xi32>
    %117 = arith.cmpi eq, %101, %116 : vector<16x128xi32>
    %cst_24 = arith.constant 0.000000e+00 : f32
    %118 = vector.shape_cast %93 : vector<1x128xf32> to vector<1x128xf32>
    %119 = vector.broadcast %118 : vector<1x128xf32> to vector<16x128xf32>
    %120 = vector.broadcast %cst_24 : f32 to vector<16x128xf32>
    %121 = arith.select %117, %119, %120 : vector<16x128xi1>, vector<16x128xf32>
    %122 = vector.shape_cast %95 : vector<1x128xf32> to vector<1x128xf32>
    %123 = vector.broadcast %122 : vector<1x128xf32> to vector<16x128xf32>
    %124 = arith.select %115, %123, %121 : vector<16x128xi1>, vector<16x128xf32>
    %c0_25 = arith.constant 0 : index
    %c0_26 = arith.constant 0 : index
    %c0_27 = arith.constant 0 : index
    %125 = vector.load %arg4[%c0_25, %c0_26, %c0_27] : memref<1x64x16xbf16, #tpu.memory_space<vmem>>, vector<1x64x16xbf16>
    %126 = vector.shape_cast %125 : vector<1x64x16xbf16> to vector<64x16xbf16>
    %cst_28 = arith.constant dense<0.000000e+00> : vector<64x128xf32>
    %127 = tpu.matmul %126, %113, %cst_28 {dimension_numbers = #tpu.dot_dimension_numbers<[1], [0], [0], [1], [0, 0, 1, 1], [], []>} : vector<64x16xbf16>, vector<16x128xbf16>, vector<64x128xf32> -> vector<64x128xf32>
    %128 = vector.shape_cast %127 : vector<64x128xf32> to vector<4x16x128xf32>
    %129 = vector.shape_cast %124 : vector<16x128xf32> to vector<1x16x128xf32>
    %130 = vector.broadcast %129 : vector<1x16x128xf32> to vector<4x16x128xf32>
    %131 = arith.mulf %128, %130 : vector<4x16x128xf32>
    %cst_29 = arith.constant dense<0.000000e+00> : vector<4x128xf32>
    %132 = vector.multi_reduction <add>, %131, %cst_29 [1] : vector<4x16x128xf32> to vector<4x128xf32>
    %c0_30 = arith.constant 0 : index
    %c0_31 = arith.constant 0 : index
    %c0_32 = arith.constant 0 : index
    %133 = vector.load %arg5[%c0_30, %c0_31, %c0_32] : memref<1x4x128xf32, #tpu.memory_space<vmem>>, vector<1x4x128xf32>
    %134 = vector.shape_cast %133 : vector<1x4x128xf32> to vector<4x128xf32>
    %135 = vector.shape_cast %132 : vector<4x128xf32> to vector<1x4x128xf32>
    tpu.vector_store %arg5[%c0_30, %c0_31, %c0_32], %135 {strides = array<i32>} : memref<1x4x128xf32, #tpu.memory_space<vmem>>, vector<1x4x128xf32>,
    return
  }
  func.func @transform_0(%arg0: i32, %arg1: i32) -> (i32, i32, i32) {
    %c0_i32 = arith.constant 0 : i32
    %c0_i32_0 = arith.constant 0 : i32
    %c0_i32_1 = arith.constant 0 : i32
    return %arg0, %c0_i32, %c0_i32_0 : i32, i32, i32
  }
  func.func @transform_1(%arg0: i32, %arg1: i32) -> (i32, i32, i32) {
    %c0_i32 = arith.constant 0 : i32
    %c0_i32_0 = arith.constant 0 : i32
    %c0_i32_1 = arith.constant 0 : i32
    return %arg0, %c0_i32, %c0_i32_0 : i32, i32, i32
  }
  func.func @transform_2(%arg0: i32, %arg1: i32) -> (i32, i32, i32) {
    %c0_i32 = arith.constant 0 : i32
    %c0_i32_0 = arith.constant 0 : i32
    %c0_i32_1 = arith.constant 0 : i32
    %c0_i32_2 = arith.constant 0 : i32
    return %c0_i32, %c0_i32_0, %c0_i32_1 : i32, i32, i32
  }
  func.func @transform_3(%arg0: i32, %arg1: i32) -> (i32, i32, i32) {
    %c0_i32 = arith.constant 0 : i32
    %c0_i32_0 = arith.constant 0 : i32
    return %arg0, %c0_i32, %arg1 : i32, i32, i32
  }
}

</mosaic_0001>

<bundles_post_ra>
// kernel: tpu_custom_call.1
= control target key start
LH: loop header
LB: loop body
LE: loop exit
PB: predicated region body
PF: predicated region fallthrough
CT: control target
= control target key end

     0   :  { %8 = vsyncpa [#allocation3], 0  ;;  %s963_s0 = inlined_call_operand.vmem [shape: f32[2,8,2], index: 0, kind: input, shape index: {}]   ;;  %s964_s1 = inlined_call_operand.vmem [shape: f32[2,11,2], index: 1, kind: input, shape index: {}]   ;;  %s965_s2 = inlined_call_operand.vmem [shape: bf16[1,64,16], index: 2, kind: input, shape index: {}]   ;;  %s966_s3 = inlined_call_operand.hbm [shape: f32[2,4,256], index: 3, kind: output, shape index: {}]  }
   0x1   :  { %10 = vsyncpa [#allocation3 + $0x1], 0  ;;  %s821_s12 = smov 0   ;;  %s823_s13 = smov 0  }
   0x2   :  { %s825_s14 = smov 0   ;;  %s827_s15 = smov 0  }
   0x3   :  { %s829_s16 = smov 0   ;;  %s831_s17 = smov 0  }
   0x4   :  { %s833_s18 = smov 0   ;;  %s835_s19 = smov 0  }
   0x5 LB: > { %s569_s20 = sadd.s32 4294967295, %s796_s19   ;;  %s570_s21 = sadd.s32 4294967294, %s796_s19   ;;  %s796_s19 = sphi %s835_s19, %s16_s19   ;;  %s792_s18 = sphi %s833_s18, %s975_s18   ;;  %s788_s17 = sphi %s831_s17, %s974_s17   ;;  %s784_s16 = sphi %s829_s16, %s973_s16   ;;  %s780_s15 = sphi %s827_s15, %s972_s15   ;;  %s776_s14 = sphi %s825_s14, %s971_s14   ;;  %s772_s13 = sphi %s823_s13, %s970_s13   ;;  %s768_s12 = sphi %s821_s12, %s969_s12  }
   0x6   : > { %s25_s22 = sadd.s32 1, %s788_s17  ;;  %s28_s23 = sadd.s32 1, %s792_s18 }
   0x7   : > { %p26_p0 = scmp.ge.s32.totalorder %s25_s22, 2  ;;  %p120_p1 = scmp.ne.s32.totalorder %s776_s14, %s772_s13 }
   0x8   : > { %p121_p2 = scmp.eq.s32.totalorder %s569_s20, 3  ;;  %p126_p5 = scmp.ne.s32.totalorder %s772_s13, %s768_s12 }
   0x9   : > { %s977_s22 = smov (%p26_p0, %s25_s22), 0  ;;  %s979_s23 = smov (!%p26_p0, %s28_s23), %s792_s18 }
   0xa   : > { %s106_s24 = ssub.s32 %s788_s17, %s977_s22  ;;  %p872_p3 = por %p121_p2, %p120_p1 }
   0xb   : > { %p30_p4 = scmp.ge.s32.totalorder %s979_s23, 2  ;;  %p127_p6 = scmp.eq.s32.totalorder %s570_s21, 3 }
   0xc   : > { %p573_p7 = scmp.ge.s32.totalorder %s796_s19, 1  ;;  %p163_p9 = scmp.lt.s32.totalorder %s796_s19, 5 }
   0xd   : > { %s981_s23 = smov (%p30_p4, %s979_s23), 0  ;;  %p881_p8 = por %p127_p6, %p126_p5 }
   0xe   : > { %s105_s27 = ssub.s32 %s792_s18, %s981_s23  ;;  %s110_s28 = sadd.s32 1, %s776_s14 }
   0xf   : > { %s107_s29 = sor.u32 %s106_s24, %s105_s27  ;;  %p164_p10 = pnand %p573_p7, %p163_p9 }
  0x10   : > { %p108_p11 = scmp.eq.s32.totalorder %s107_s29, 0  ;;  %p191_p12 = scmp.lt.s32.totalorder (!%p164_p10), %s784_s16, 1 }
  0x11   : > { %167 = sbr.rel (%p164_p10) target bundleno = 372 (0x174), region = 32  ;;  %s578_s21 = sshll.u32 (!%p164_p10), %s780_s15, 7 }
  0x12   : > { %s890_s30 = scalar_select %p108_p11, %s776_s14, %s110_s28  }
  0x13   : > { %s203_s24 = ssub.s32 (!%p164_p10), 0, %s578_s21  ;;  %p202_p13 = scmp.lt.s32.totalorder (!%p164_p10), %s578_s21, 0 }
  0x14   : > { %s579_s27 = smin.u32 (!%p164_p10), %s578_s21, %s203_s24 }
  0x15   : > { %s205_s28 = sshrl.u32 (!%p164_p10), %s579_s27, 4  ;;  %s604_s27 = sshll.u32 (!%p164_p10), %s784_s16, 1 }
  0x16   : > { %v798_v0 = vmov 0   ;;  %s192_s4 = scalar_select %p191_p12, %s784_s16, 1  ;;  %v799_v1 = vmov 1   ;;  %v800_v5 = vmov 16.0   ;;  %v210_v7 = vlaneseq }
  0x17   : > { %694 = vset.pattern.permute.xlu0 %v798_v0  ;;  %696 = vset.pattern.permute.xlu1 %v798_v0  ;;  %s206_s29 = ssub.s32 0, %s205_s28  ;;  %698 = vrcp.f32 %v800_v5  ;;  %vm377_vm9 = vcmask 130048   ;;  %vm459_vm10 = vcmask 1041409   ;;  %vm461_vm11 = vcmask 1042434  }
  0x18   : > { %697 = vset.pattern.permute.xlu2 %v799_v1  ;;  %s575_s5 = sshll.u32 %s192_s4, 3  ;;  %s608_s6 = sshll.u32 %s192_s4, 4  ;;  %v211_v9 = vand.u32 127, %v210_v7  ;;  %v320_v5 = vshrl.u32 %v210_v7, 7  ;;  %vm463_vm12 = vcmask 1043459  }
  0x19   : > { %s194_s9 = scalar_lea.vmem %s963_s0, %s575_s5  ;;  %s199_s20 = scalar_lea.vmem %s964_s1, %s608_s6 }
  0x1a   : > { %v232_v2 = vld [vmem:[%s194_s9] sm:$0xff]  ;;  %v234_v4 = vld [vmem:[%s199_s20 + $0x8] sm:$0x7]  ;;  %s983_s29 = smov (!%p202_p13, %s206_s29), %s205_s28  ;;  %s188_s28 = sand.u32 1, %s772_s13  }
  0x1b   : > { %v233_v3 = vld [vmem:[%s199_s20] sm:$0xff]  ;;  %237 = vperm.xlu0 %694, %v232_v2   ;;  %s580_s4 = sshll.u32 %s983_s29, 4  ;;  %s228_s6 = scvt.s32.f32 %s983_s29 }
  0x1c   : > { %255 = vperm.xlu1 %696, %v233_v3   ;;  %282 = vperm.xlu2 %697, %v233_v3   ;;  %s209_s5 = ssub.s32 %s578_s21, %s580_s4  ;;  %s478_s29 = sadd.s32 %s780_s15, %s604_s27 }
  0x1d   : > { %v699_v6 = vpop.eup %698  ;;  %v212_v10 = vstv %s209_s5  ;;  %v229_v22 = vstv %s228_s6  ;;  %s574_s4 = sshll.u32 %s188_s28, 2  ;;  %s605_s5 = sshll.u32 %s478_s29, 2 }
  0x1e   : > { %v217_v8 = vmul.f32 16.0, %v699_v6  ;;  %v213_v12 = vadd.s32 %v212_v10, %v211_v9  ;;  %vm221_vm0 = vweird.f32 %v699_v6  ;;  %s480_s15 = scalar_lea.hbm %s966_s3, %s605_s5  ;;  %s190_s7 = scalar_lea.vmem [#allocation2], %s574_s4 }
  0x1f   : > { %s482_s8 = sshll.u32 %s190_s7, 4  ;;  %s484_s9 = sshll.u32 %s480_s15, 4  ;;  %s483_s8 = int_to_ptr.vmem [resolvable:$true] %s482_s8  ;;  %s485_s9 = int_to_ptr.hbm [resolvable:$true] %s484_s9 }
  0x20   : > { %v218_v11 = vsub.f32 1.0, %v217_v8  ;;  %v214_v14 = vcvt.s32.f32 %v213_v12  ;;  %s468_s10 = scalar_lea.sflag [#allocation3], %s188_s28  ;;  %s716_s11 = sshra.s32 %s485_s9, 4  ;;  %s717_s11 = int_to_ptr.hbm [resolvable:$true] %s716_s11 }
  0x21   : > { %s718_s20 = scalar_lea.hbm %s717_s11, 4  ;;  %s722_s27 = scalar_lea.hbm %s966_s3, 16 }
  0x22   : > { %v219_v13 = vmul.f32 %v699_v6, %v218_v11  ;;  %v215_v16 = vadd.f32 0.5, %v214_v14  ;;  %v321_v11 = vadd.s32 8, %v320_v5  ;;  %p719_p0 = scmp.ne.s32.totalorder %s717_s11, %s718_s20  ;;  %p723_p4 = scmp.lt.s32.totalorder %s717_s11, %s966_s3 }
  0x23   : > { %695 = vset.pattern.permute.xlu0 %v799_v1  ;;  %p724_p5 = scmp.lt.s32.totalorder %s722_s27, %s718_s20 }
  0x24   : > { %267 = vperm.xlu1 %696, %v234_v4   ;;  %243 = vperm.xlu0 %695, %v232_v2   ;;  %v220_v15 = vadd.f32 %v699_v6, %v219_v13  ;;  %p720_p1 = pnand %p719_p0, %p872_p3 }
  0x25   : > { %293 = vperm.xlu2 %697, %v234_v4   ;;  %p725_p6 = por %p724_p5, %p723_p4 }
  0x26   : > { %v222_v17 = vsel %vm221_vm0, %v699_v6, %v220_v15  ;;  %p721_p2 = pneg %p720_p1 }
  0x27   : > { %v223_v18 = vmul.f32 %v222_v17, %v215_v16 }
  0x28   : > { %p726_p7 = pnand %p725_p6, %p721_p2 }
  0x29   : > { %v224_v19 = vfloor.f32 %v223_v18 }
  0x2b   : > { %v225_v20 = vmul.f32 16.0, %v224_v19  ;;  %v230_v24 = vadd.f32 %v229_v22, %v224_v19 }
  0x2d   : > { %v226_v23 = vsub.f32 %v214_v14, %v225_v20 }
  0x76   : > { %v283_v35 = vpop.permute.xlu2 %282 }
  0x7f   : > { %v294_v43 = vpop.permute.xlu2 %293 }
  0x80   : > { %v297_v49 = vmul.f32 %v294_v43, %v226_v23  ;;  %v302_v53 = vmul.f32 %v294_v43, %v230_v24 }
  0x82   : > { %v299_v57 = vrot.slane %v297_v49, 1  ;;  %v304_v61 = vrot.slane %v302_v53, 2 }
  0x8d   : > { %v238_v21 = vpop.permute.xlu0 %237 }
  0x8e   : > { %v240_v25 = vsub.f32 %v226_v23, %v238_v21  ;;  %v256_v34 = vpop.permute.xlu1 %255 }
  0x90   : > { %v241_v28 = vmul.f32 %v240_v25, %v240_v25 }
  0x96   : > { %v244_v26 = vpop.permute.xlu0 %243  ;;  %v268_v46 = vpop.permute.xlu1 %267 }
  0x97   : > { %v246_v27 = vsub.f32 %v230_v24, %v244_v26  ;;  %v271_v51 = vmul.f32 %v268_v46, %v226_v23  ;;  %v276_v55 = vmul.f32 %v268_v46, %v230_v24 }
  0x99   : > { %v247_v29 = vmul.f32 %v246_v27, %v246_v27  ;;  %v273_v59 = vrot.slane %v271_v51, 1  ;;  %v278_v63 = vrot.slane %v276_v55, 2 }
  0x9b   : > { %v248_v30 = vadd.f32 %v247_v29, %v241_v28 }
  0x9d   : > { %v249_v31 = vadd.f32 1e-07, %v248_v30 }
  0x9f   : > { %700 = vlog2.f32 %v249_v31 }
  0xa5   : > { %v701_v32 = vpop.eup %700 }
  0xa6   : > { %v251_v33 = vmul.f32 0.6931472, %v701_v32 }
  0xa8   : > { %v252_v36 = vmul.f32 %v251_v33, %v248_v30 }
  0xaa   : > { %v258_v37 = vmul.f32 %v256_v34, %v252_v36  ;;  %v285_v38 = vmul.f32 %v283_v35, %v252_v36  ;;  %v609_v34 = vld [vmem:[%s965_s2] sm:$0xff]  ;;  %v610_v35 = vld [vmem:[%s965_s2 + $0x8] sm:$0xff] }
  0xac   : > { %v259_v39 = vrot.slane %v258_v37, 4  ;;  %v286_v40 = vrot.slane %v285_v38, 4 }
  0xae   : > { %v260_v41 = vadd.f32 %v259_v39, %v258_v37  ;;  %v287_v42 = vadd.f32 %v286_v40, %v285_v38  ;;  %v611_v37 = vld [vmem:[%s965_s2 + $0x10] sm:$0xff]  ;;  %v612_v38 = vld [vmem:[%s965_s2 + $0x18] sm:$0xff] }
  0xb0   : > { %v261_v44 = vrot.slane %v260_v41, 2  ;;  %v288_v45 = vrot.slane %v287_v42, 2 }
  0xb2   : > { %v262_v47 = vadd.f32 %v261_v44, %v260_v41  ;;  %v289_v48 = vadd.f32 %v288_v45, %v287_v42 }
  0xb4   : > { %v263_v50 = vrot.slane %v262_v47, 1  ;;  %v290_v52 = vrot.slane %v289_v48, 1 }
  0xb6   : > { %v264_v54 = vadd.f32 %v263_v50, %v262_v47  ;;  %v291_v56 = vadd.f32 %v290_v52, %v289_v48 }
  0xb8   : > { %v270_v58 = vadd.f32 %v268_v46, %v264_v54  ;;  %v296_v60 = vadd.f32 %v294_v43, %v291_v56 }
  0xba   : > { %v275_v62 = vadd.f32 %v273_v59, %v270_v58  ;;  %v301_v0 = vadd.f32 %v299_v57, %v296_v60 }
  0xbc   : > { %v280_v1 = vadd.f32 %v278_v63, %v275_v62  ;;  %v306_v2 = vadd.f32 %v304_v61, %v301_v0 }
  0xbe   : > { %v307_v3 = vmul.f32 1.0666667, %v280_v1  ;;  %v309_v4 = vmul.f32 1.0666667, %v306_v2 }
  0xc0   : > { %v581_v6 = vadd.f32 -0.5, %v307_v3  ;;  %v582_v8 = vadd.f32 -0.5, %v309_v4 }
  0xc2   : > { %v311_v9 = vfloor.f32 %v581_v6  ;;  %v312_v10 = vfloor.f32 %v582_v8 }
  0xc4   : > { %v617_v12 = vcvt.f32.s32 %v311_v9  ;;  %v315_v13 = vsub.f32 %v581_v6, %v311_v9  ;;  %v619_v14 = vcvt.f32.s32 %v312_v10  ;;  %v317_v15 = vsub.f32 %v582_v8, %v312_v10 }
  0xc6   : > { %v316_v16 = vsub.f32 1.0, %v315_v13  ;;  %v322_v17 = vperm.slane %v617_v12, 0  ;;  %v318_v18 = vsub.f32 1.0, %v317_v15  ;;  %v325_v19 = vperm.slane %v619_v14, 0 }
  0xc7   : > { %v332_v22 = vperm.slane %v315_v13, 0  ;;  %v343_v23 = vperm.slane %v317_v15, 0 }
  0xc8   : > { %v323_v20 = vsub.s32 %v320_v5, %v322_v17  ;;  %v324_v21 = vsub.s32 %v321_v11, %v322_v17  ;;  %v335_v24 = vperm.slane %v316_v16, 0  ;;  %v326_v25 = vsub.s32 %v320_v5, %v325_v19 }
  0xc9   : > { %v346_v7 = vperm.slane %v318_v18, 0  ;;  %v327_v26 = vsub.s32 %v321_v11, %v325_v19 }
  0xca   : > { %vm328_vm1 = vcmp.eq.s32.totalorder %v323_v20, 0  ;;  %vm329_vm2 = vcmp.eq.s32.totalorder %v324_v21, 0  ;;  %vm330_vm3 = vcmp.eq.s32.totalorder %v323_v20, 1  ;;  %vm331_vm4 = vcmp.eq.s32.totalorder %v324_v21, 1 }
  0xcb   : > { %v333_v27 = vsel %vm330_vm3, %v332_v22, 0.0  ;;  %v334_v28 = vsel %vm331_vm4, %v332_v22, 0.0  ;;  %vm339_vm5 = vcmp.eq.s32.totalorder %v326_v25, 0  ;;  %vm341_vm6 = vcmp.eq.s32.totalorder %v326_v25, 1 }
  0xcc   : > { %v336_v29 = vsel %vm328_vm1, %v335_v24, %v333_v27  ;;  %v337_v30 = vsel %vm329_vm2, %v335_v24, %v334_v28  ;;  %v344_v31 = vsel %vm341_vm6, %v343_v23, 0.0  ;;  %vm340_vm7 = vcmp.eq.s32.totalorder %v327_v26, 0 }
  0xcd   : > { %v338_v32 = vpack.c.bf16 %v337_v30, %v336_v29  ;;  %v347_v33 = vsel %vm339_vm5, %v346_v7, %v344_v31  ;;  %vm342_vm8 = vcmp.eq.s32.totalorder %v327_v26, 1 }
  0xce   : > { %v345_v36 = vsel %vm342_vm8, %v343_v23, 0.0 }
  0xcf   : > { %397 = vmatpush.bf16.msra.mxu0 %v338_v32  ;;  %613 = vmatpush.bf16.msra.mxu1 %v338_v32  ;;  %v348_v39 = vsel %vm340_vm7, %v346_v7, %v345_v36 }
  0xd0   : > { %614 = vmatpush.bf16.msra.mxu2 %v338_v32  ;;  %615 = vmatpush.bf16.msra.mxu3 %v338_v32 }
  0xd2   : > { %599 = vmatmul.msk.bf16.vlgmr.msra.gmra.mxu0 %vm377_vm9, %v609_v34  ;;  %600 = vmatmul.msk.bf16.vlgmr.msra.gmra.mxu1 %vm377_vm9, %v610_v35 }
  0xd3   : > { %601 = vmatmul.msk.bf16.vlgmr.msra.gmra.mxu2 %vm377_vm9, %v611_v37  ;;  %602 = vmatmul.msk.bf16.vlgmr.msra.gmra.mxu3 %vm377_vm9, %v612_v38 }
 0x14f   : > { %v399_v40 = vpop.f32.mrf.mxu0  ;;  %v404_v41 = vpop.f32.mrf.mxu1 }
 0x150   : > { %v419_v46 = vmul.f32 %v399_v40, %v347_v33  ;;  %v421_v47 = vmul.f32 %v404_v41, %v347_v33 }
 0x156   : > { %v409_v42 = vpop.f32.mrf.mxu2  ;;  %v414_v43 = vpop.f32.mrf.mxu3 }
 0x157   : > { %v401_v44 = vpop.f32.mrf.mxu0  ;;  %v406_v45 = vpop.f32.mrf.mxu1  ;;  %v423_v58 = vmul.f32 %v409_v42, %v347_v33  ;;  %v425_v59 = vmul.f32 %v414_v43, %v347_v33 }
 0x158   : > { %v420_v48 = vmul.f32 %v401_v44, %v348_v39  ;;  %v422_v49 = vmul.f32 %v406_v45, %v348_v39 }
 0x15a   : > { %v427_v50 = vadd.f32 %v420_v48, %v419_v46  ;;  %v434_v51 = vadd.f32 %v422_v49, %v421_v47 }
 0x15c   : > { %v428_v52 = vrot.slane %v427_v50, 4  ;;  %v435_v53 = vrot.slane %v434_v51, 4 }
 0x15e   : > { %v429_v54 = vadd.f32 %v428_v52, %v427_v50  ;;  %v436_v55 = vadd.f32 %v435_v53, %v434_v51  ;;  %v411_v56 = vpop.f32.mrf.mxu2  ;;  %v416_v57 = vpop.f32.mrf.mxu3 }
 0x15f   : > { %v424_v60 = vmul.f32 %v411_v56, %v348_v39  ;;  %v426_v61 = vmul.f32 %v416_v57, %v348_v39 }
 0x160   : > { %v430_v62 = vrot.slane %v429_v54, 2  ;;  %v437_v63 = vrot.slane %v436_v55, 2 }
 0x161   : > { %v441_v0 = vadd.f32 %v424_v60, %v423_v58  ;;  %v448_v1 = vadd.f32 %v426_v61, %v425_v59 }
 0x162   : > { %v431_v2 = vadd.f32 %v430_v62, %v429_v54  ;;  %v438_v3 = vadd.f32 %v437_v63, %v436_v55 }
 0x163   : > { %v442_v4 = vrot.slane %v441_v0, 4  ;;  %v449_v5 = vrot.slane %v448_v1, 4 }
 0x164   : > { %v432_v6 = vrot.slane %v431_v2, 1  ;;  %v439_v8 = vrot.slane %v438_v3, 1 }
 0x165   : > { %v443_v9 = vadd.f32 %v442_v4, %v441_v0  ;;  %v450_v10 = vadd.f32 %v449_v5, %v448_v1 }
 0x166   : > { %v433_v11 = vadd.f32 %v432_v6, %v431_v2  ;;  %v440_v12 = vadd.f32 %v439_v8, %v438_v3 }
 0x167   : > { %v444_v13 = vrot.slane %v443_v9, 2  ;;  %v451_v14 = vrot.slane %v450_v10, 2 }
 0x168   : > { %v460_v15 = vsel %vm459_vm10, %v440_v12, %v433_v11 }
 0x169   : > { %v445_v16 = vadd.f32 %v444_v13, %v443_v9  ;;  %v452_v17 = vadd.f32 %v451_v14, %v450_v10 }
 0x16b   : > { %v446_v18 = vrot.slane %v445_v16, 1  ;;  %v453_v19 = vrot.slane %v452_v17, 1 }
 0x16d   : > { %v447_v20 = vadd.f32 %v446_v18, %v445_v16  ;;  %v454_v21 = vadd.f32 %v453_v19, %v452_v17 }
 0x16f   : > { %v462_v22 = vsel %vm461_vm11, %v447_v20, %v460_v15 }
 0x170   : > { %v464_v23 = vsel %vm463_vm12, %v454_v21, %v462_v22 }
 0x171   : > { %466 = vst [vmem:[%s190_s7] sm:$0xf] %v464_v23 }
 0x172   : > { %729 = shalt.err (!%p726_p7)
}
 0x173   : > { %620 = dma.vmem_to_hbm [thread:$0]  (%p872_p3), %s483_s8, 64, %s485_s9, %s468_s10  }
 0x174 PF: > { %p626_p9 = scmp.ge.s32.totalorder %s796_s19, 2  ;;  %s496_s28 = sand.u32 1, %s768_s12  }
 0x175   : > { %s497_s5 = scalar_lea.sflag [#allocation3], %s496_s28 }
 0x176   : > { %p623_p10 = pnand %p626_p9, %p881_p8 }
 0x178   : > { %p624_p11 = pneg %p623_p10 }
 0x17a   : > { %763 = dma.done.wait (%p624_p11), %s497_s5, 64  }
 0x17b   : > { %765 = vsyncadd (%p624_p11), %s497_s5, 4294967232  ;;  %s16_s19 = sadd.s32 1, %s796_s19   ;;  %s969_s12 = smov %s772_s13 }
 0x17c   : > { %p13_p12 = scmp.ge.s32.totalorder %s16_s19, 6   ;;  %s970_s13 = smov %s776_s14 }
 0x17d   : > { %s971_s14 = smov %s890_s30  ;;  %s972_s15 = smov %s788_s17 }
 0x17e   : > { %s973_s16 = smov %s792_s18  ;;  %s974_s17 = smov %s977_s22 }
 0x17f   : > { %s975_s18 = smov %s981_s23  ;;  %15 = sbr.rel (!%p13_p12) target bundleno = 5 (0x5), region = 70 }
 0x184   :  { %503 = vsyncpa [#allocation3], 1 }
 0x185   :  { %505 = vsyncpa [#allocation3 + $0x1], 1 }

</bundles_post_ra>
